<compile_context>
chip_gen: v5e
topology: v5e:2x2
jax: 0.10.0
libtpu: 0.0.40
codegen_flags: <defaults>
</compile_context>

<pallas_src>
import functools

import numpy as np
import jax
import jax.numpy as jnp
from jax.experimental import pallas as pl
from jax.experimental.pallas import tpu as pltpu

KSIZE = 5     # Conv2d kernel size (fixed by the reference module)
PAD = 2       # Conv2d padding     (fixed by the reference module)
LANES = 128   # TPU lane width


def _round_up(x, m):
    return ((x + m - 1) // m) * m


def _auto_batch_block(n, cap=16):
    """Largest divisor of n that is <= cap, preferring a grid length >= 2 (v7x 2 TCs)."""
    divs = [d for d in range(1, min(n, cap) + 1) if n % d == 0]
    two_core = [d for d in divs if n // d >= 2]
    return max(two_core) if two_core else max(divs)


# --------------------------------------------------------------------------- #
# Fused encoder kernel
# --------------------------------------------------------------------------- #
def _make_encoder_kernel(bb, h2, kpad, cw, n_fc):
    """Builds the fused encoder kernel body.

    bb   : samples per grid step
    h2   : H // 2 (pooled height; conv rows per output-row parity)
    kpad : im2row contraction width, round_up(5*(W+4)*Cin, 128)
    cw   : Cout * W conv-output lanes; col = (w%2)*cw/2 + (w//2)*Cout + co
    n_fc : number of fc_blocks
    """
    half = cw // 2

    def kernel(x_ref, wk_ref, scale_ref, shift_ref, *refs):
        o_ref = refs[-1]
        fc_refs = refs[:-1]

        # Folded BatchNorm (eval) scale/shift — loaded once (applied once, below).
        sc = scale_ref[...]                                  # (1, cw) f32
        sh = shift_ref[...]

        # Conv2d(5x5, pad=2) as ONE bf16 matmul: rows are (sample, h-parity, h//2).
        lhs = x_ref[...].reshape(bb * 2 * h2, kpad)          # bf16, contiguous
        acc = jnp.dot(lhs, wk_ref[...],
                      preferred_element_type=jnp.float32)    # (bb*2*h2, cw) f32
        y = jnp.maximum(acc * sc + sh, 0.0)                  # BN(eval) + ReLU

        # MaxPool2d(2): max over h-parity (sublane groups), then w-parity (lane halves).
        y4 = y.reshape(bb, 2, h2, cw)
        ymax = jnp.maximum(y4[:, 0], y4[:, 1])               # (bb, h2, cw)
        pooled = jnp.maximum(ymax[..., :half], ymax[..., half:])   # (bb, h2, half)

        # fc_block 0: NCHW flatten folded into the weight; adjacent pooled rows paired
        # into 128-lane operands -> h2/2 dots with K = 2*half = 128.
        w0_ref, b0_ref = fc_refs[0], fc_refs[1]
        f0 = w0_ref.shape[1]
        acc0 = jnp.zeros((bb, f0), jnp.float32)
        for rp in range(h2 // 2):
            lhs0 = jnp.concatenate(
                [pooled[:, 2 * rp, :], pooled[:, 2 * rp + 1, :]], axis=-1
            ).astype(jnp.bfloat16)                           # (bb, 2*half)
            acc0 = acc0 + jnp.dot(
                lhs0, w0_ref[2 * rp * half:(2 * rp + 2) * half, :],
                preferred_element_type=jnp.float32)
        if h2 % 2:                                           # odd-h2 tail (unused at 8x8)
            r = h2 - 1
            acc0 = acc0 + jnp.dot(
                pooled[:, r, :].astype(jnp.bfloat16),
                w0_ref[r * half:(r + 1) * half, :],
                preferred_element_type=jnp.float32)
        z = jnp.maximum(acc0 + b0_ref[...], 0.0)

        # Remaining fc_blocks (all widths zero-padded to 128 lanes offline).
        for li in range(1, n_fc):
            w_ref, b_ref = fc_refs[2 * li], fc_refs[2 * li + 1]
            z = jnp.maximum(
                jnp.dot(z.astype(jnp.bfloat16), w_ref[...],
                        preferred_element_type=jnp.float32) + b_ref[...], 0.0)

        o_ref[...] = z.reshape(1, bb, z.shape[-1])

    return kernel


# --------------------------------------------------------------------------- #
# Forward wrapper (single pallas_call)
# --------------------------------------------------------------------------- #
def encoder_forward(x_nchw, prep, *, out_dim, batch_block=None):
    wk, scale, shift = prep["wk"], prep["scale"], prep["shift"]
    fc_tensors = prep["fc"]

    n, cin, h, w = x_nchw.shape
    hpad = h + 2 * PAD
    wcin = (w + 2 * PAD) * cin
    kraw = KSIZE * wcin
    kpad = _round_up(kraw, LANES)
    cw = wk.shape[1]
    h2 = h // 2
    n_fc = len(fc_tensors) // 2
    fpad_out = fc_tensors[-2].shape[1]          # padded head width (multiple of 128)

    bb = _auto_batch_block(n) if batch_block is None else batch_block
    assert n % bb == 0 and h % 2 == 0 and w % 2 == 0
    assert wk.shape[0] == kpad

    # im2row prep (one small fused XLA copy, ~32 KiB/sample):
    # NCHW -> padded NHWC rows flattened to (W+4)*Cin lanes -> 5 shifted row slices
    # concatenated along lanes (K = 5*wcin) -> lane-pad to 128-multiple ->
    # h-parity-major row order -> bf16.
    x = jnp.transpose(x_nchw, (0, 2, 3, 1))
    xpad = jnp.pad(x, ((0, 0), (PAD, PAD), (PAD, PAD), (0, 0)))
    xrows = xpad.reshape(n, hpad, wcin)
    xim = jnp.concatenate([xrows[:, kh:kh + h, :] for kh in range(KSIZE)], axis=-1)
    xim = jnp.pad(xim, ((0, 0), (0, 0), (0, kpad - kraw)))
    xim = (xim.reshape(n, h2, 2, kpad).transpose(0, 2, 1, 3)
              .reshape(n, 2 * h2, kpad).astype(jnp.bfloat16))

    kernel = _make_encoder_kernel(bb, h2, kpad, cw, n_fc)

    def _full(a):
        zero = (0,) * a.ndim
        return pl.BlockSpec(a.shape, lambda g, _z=zero: _z)

    in_specs = [pl.BlockSpec((bb, 2 * h2, kpad), lambda g: (g, 0, 0)),
                _full(wk), _full(scale), _full(shift)]
    in_specs += [_full(t) for t in fc_tensors]

    out = pl.pallas_call(
        kernel,
        out_shape=jax.ShapeDtypeStruct((n // bb, bb, fpad_out), jnp.float32),
        grid=(n // bb,),
        in_specs=in_specs,
        out_specs=pl.BlockSpec((1, bb, fpad_out), lambda g: (g, 0, 0)),
        compiler_params=pltpu.CompilerParams(dimension_semantics=("parallel",)),
    )(xim, wk, scale, shift, *fc_tensors)

    z = out.reshape(n, fpad_out)[:, :out_dim]
    split = out_dim // 2
    # TODO(synk): reference wraps this in torch.distributions.Normal(loc, scale).
    return z[:, :split], z[:, split:]


# --------------------------------------------------------------------------- #
# Offline parameter preparation (layout folding; runs once, outside the jit path)
# --------------------------------------------------------------------------- #
def prepare_params(raw, hw, eps=1e-5):
    h, w = hw
    assert len(raw["conv"]) == 1, "fused kernel currently supports one conv_block"

    cp = raw["conv"][0]
    k = np.asarray(cp["w"], np.float32)                 # (Cout, Cin, 5, 5)
    cout, cin, kh_, kw_ = k.shape
    assert kh_ == KSIZE and kw_ == KSIZE
    wcin = (w + 2 * PAD) * cin
    kraw = KSIZE * wcin
    kpad = _round_up(kraw, LANES)
    cw = cout * w
    half = cw // 2
    h2, w2 = h // 2, w // 2

    # Conv weight as one (kpad, Cout*W) im2row matrix; row = kh*wcin + (w+kw)*Cin + ci,
    # col = (w%2)*half + (w//2)*Cout + co (lane-dense, pool-friendly). Pad rows are zero.
    wk = np.zeros((kpad, cw), np.float32)
    for kh in range(KSIZE):
        for kw in range(KSIZE):
            for ww in range(w):
                r = kh * wcin + (ww + kw) * cin
                c = (ww % 2) * half + (ww // 2) * cout
                wk[r:r + cin, c:c + cout] = k[:, :, kh, kw].T

    # Folded BatchNorm (eval) + conv bias -> per-lane scale/shift vectors.
    scale = np.asarray(cp["gamma"], np.float32) / np.sqrt(
        np.asarray(cp["var"], np.float32) + eps)
    shift = (np.asarray(cp["b"], np.float32)
             - np.asarray(cp["mean"], np.float32)) * scale + np.asarray(cp["beta"], np.float32)
    scale_vec = np.tile(scale, w).reshape(1, cw)        # lane % Cout == co
    shift_vec = np.tile(shift, w).reshape(1, cw)

    # FC weights: fold the NCHW flatten permutation into fc0 (stored as h2 stacked
    # (W/2*Cout, Fpad) blocks); pad ALL output widths to 128 lanes (lane-dense stores);
    # matmul operands stored in bf16, biases stay f32.
    fcs = raw["fc"]
    n_fc = len(fcs)
    tensors = []

    w0 = np.asarray(fcs[0]["w"], np.float32)            # (F1, Cout*H2*W2) torch (out, in)
    b0 = np.asarray(fcs[0]["b"], np.float32)
    f1 = w0.shape[0]
    assert w0.shape[1] == cout * h2 * w2
    f1p = _round_up(f1, LANES)
    w0k = np.zeros((h2 * half, f1p), np.float32)
    for i in range(h2):
        for j in range(w2):
            for co in range(cout):
                w0k[i * half + j * cout + co, :f1] = w0[:, co * h2 * w2 + i * w2 + j]
    b0k = np.zeros((1, f1p), np.float32)
    b0k[0, :f1] = b0
    tensors += [jnp.asarray(w0k, jnp.bfloat16), jnp.asarray(b0k, jnp.float32)]

    fprev, fprev_p = f1, f1p
    for li in range(1, n_fc):
        wl = np.asarray(fcs[li]["w"], np.float32)       # (Fout, Fin)
        bl = np.asarray(fcs[li]["b"], np.float32)
        fo = wl.shape[0]
        assert wl.shape[1] == fprev
        fop = _round_up(fo, LANES)
        wlk = np.zeros((fprev_p, fop), np.float32)
        wlk[:fprev, :fo] = wl.T
        blk = np.zeros((1, fop), np.float32)
        blk[0, :fo] = bl
        tensors += [jnp.asarray(wlk, jnp.bfloat16), jnp.asarray(blk, jnp.float32)]
        fprev, fprev_p = fo, fop

    prep = {"wk": jnp.asarray(wk, jnp.bfloat16),
            "scale": jnp.asarray(scale_vec, jnp.float32),
            "shift": jnp.asarray(shift_vec, jnp.float32),
            "fc": tensors}
    return prep, fprev        # fprev = real (unpadded) head width


# --------------------------------------------------------------------------- #
# Deterministic parameter init (PyTorch layouts) and pure-XLA reference
# --------------------------------------------------------------------------- #
def init_params(key, filters, fc):
    params = {"conv": [], "fc": []}
    for cin, cout in zip(filters[:-1], filters[1:]):
        key, k1, k2, k3, k4 = jax.random.split(key, 5)
        params["conv"].append(dict(
            w=0.1 * jax.random.normal(k1, (cout, cin, 5, 5), jnp.float32),
            b=0.1 * jax.random.normal(k2, (cout,), jnp.float32),
            gamma=1.0 + 0.1 * jax.random.normal(k3, (cout,), jnp.float32),
            beta=0.1 * jax.random.normal(k4, (cout,), jnp.float32),
            mean=jnp.zeros((cout,), jnp.float32),
            var=jnp.ones((cout,), jnp.float32),
        ))
    for fin, fout in zip(fc[:-1], fc[1:]):
        key, k1, k2 = jax.random.split(key, 3)
        params["fc"].append(dict(
            w=(1.0 / jnp.sqrt(fin)) * jax.random.normal(k1, (fout, fin), jnp.float32),
            b=0.1 * jax.random.normal(k2, (fout,), jnp.float32),
        ))
    return params


def encoder_reference(x_nchw, raw, eps=1e-5):
    """Pure-XLA f32 reference with the same (Linear+ReLU fc_block, eval-BN) semantics."""
    p = raw["conv"][0]
    y = jax.lax.conv_general_dilated(
        x_nchw, p["w"], window_strides=(1, 1), padding=((PAD, PAD), (PAD, PAD)),
        dimension_numbers=("NCHW", "OIHW", "NCHW"),
        precision=jax.lax.Precision.HIGHEST)
    y = y + p["b"][None, :, None, None]
    scale = p["gamma"] / jnp.sqrt(p["var"] + eps)
    y = (y - p["mean"][None, :, None, None]) * scale[None, :, None, None] \
        + p["beta"][None, :, None, None]
    y = jnp.maximum(y, 0.0)
    n, c, h, w = y.shape
    y = y.reshape(n, c, h // 2, 2, w // 2, 2).max(axis=(3, 5))
    z = y.reshape(n, -1)
    for q in raw["fc"]:
        z = jnp.maximum(
            jnp.dot(z, q["w"].T, precision=jax.lax.Precision.HIGHEST) + q["b"], 0.0)
    split = z.shape[-1] // 2
    return z[:, :split], z[:, split:]


if __name__ == "__main__":
    key = jax.random.PRNGKey(0)
    kx, kp, kx2 = jax.random.split(key, 3)

    # One conv block: 16x16 -> 8x8 spatial, matching Reshape(-1, filters[-1]*8*8).
    filters = [4, 8]
    fc = [filters[-1] * 8 * 8, 64, 32]

    raw = init_params(kp, filters, fc)
    prep, out_dim = prepare_params(raw, (16, 16))

    fwd = jax.jit(functools.partial(encoder_forward, out_dim=out_dim))

    # Small-shape check: batch=2 -> bb=1, grid=2 (both v7x TensorCores get a step).
    x = jax.random.normal(kx, (2, 4, 16, 16), jnp.float32)   # NCHW, like PyTorch
    mu, std = fwd(x, prep)
    jax.block_until_ready((mu, std))
    assert mu.shape == (2, 16) and std.shape == (2, 16)
    assert bool(jnp.all(jnp.isfinite(mu))) and bool(jnp.all(jnp.isfinite(std)))

    # Tolerance reflects bf16 matmul operands (f32 accumulation) vs a HIGHEST-precision
    # f32 reference; values are O(1) so this still catches any layout/semantics bug.
    mu_ref, std_ref = encoder_reference(x, raw)
    np.testing.assert_allclose(np.asarray(mu), np.asarray(mu_ref), rtol=5e-2, atol=5e-2)
    np.testing.assert_allclose(np.asarray(std), np.asarray(std_ref), rtol=5e-2, atol=5e-2)

    # Larger batch exercises the MXU-saturating path: bb=16 -> conv matmul M=256, grid=2.
    x2 = jax.random.normal(kx2, (32, 4, 16, 16), jnp.float32)
    mu2, std2 = fwd(x2, prep)
    jax.block_until_ready((mu2, std2))
    mu2_ref, std2_ref = encoder_reference(x2, raw)
    np.testing.assert_allclose(np.asarray(mu2), np.asarray(mu2_ref), rtol=5e-2, atol=5e-2)
    np.testing.assert_allclose(np.asarray(std2), np.asarray(std2_ref), rtol=5e-2, atol=5e-2)

    print("KERNEL_OK")
</pallas_src>

<mosaic_0001>
module attributes {stable_mosaic.version = 11 : i64} {
  func.func @kernel(%arg0: i32, %arg1: memref<1x16x512xbf16, #tpu.memory_space<vmem>>, %arg2: memref<512x128xbf16, #tpu.memory_space<vmem>>, %arg3: memref<1x128xf32, #tpu.memory_space<vmem>>, %arg4: memref<1x128xf32, #tpu.memory_space<vmem>>, %arg5: memref<512x128xbf16, #tpu.memory_space<vmem>>, %arg6: memref<1x128xf32, #tpu.memory_space<vmem>>, %arg7: memref<128x128xbf16, #tpu.memory_space<vmem>>, %arg8: memref<1x128xf32, #tpu.memory_space<vmem>>, %arg9: memref<1x1x128xf32, #tpu.memory_space<vmem>>) attributes {dimension_semantics = [#tpu.dimension_semantics<parallel>], iteration_bounds = array<i64: 2>, scalar_prefetch = 0 : i64, scratch_operands = 0 : i64, tpu.core_type = #tpu.core_type<tc>, window_params = [{transform_indices = @transform_0, window_bounds = array<i64: 1, 16, 512>}, {pipeline_mode = #tpu.pipeline_mode<synchronous>, transform_indices = @transform_1, window_bounds = array<i64: 512, 128>}, {pipeline_mode = #tpu.pipeline_mode<synchronous>, transform_indices = @transform_2, window_bounds = array<i64: 1, 128>}, {pipeline_mode = #tpu.pipeline_mode<synchronous>, transform_indices = @transform_3, window_bounds = array<i64: 1, 128>}, {pipeline_mode = #tpu.pipeline_mode<synchronous>, transform_indices = @transform_4, window_bounds = array<i64: 512, 128>}, {pipeline_mode = #tpu.pipeline_mode<synchronous>, transform_indices = @transform_5, window_bounds = array<i64: 1, 128>}, {pipeline_mode = #tpu.pipeline_mode<synchronous>, transform_indices = @transform_6, window_bounds = array<i64: 128, 128>}, {pipeline_mode = #tpu.pipeline_mode<synchronous>, transform_indices = @transform_7, window_bounds = array<i64: 1, 128>}, {transform_indices = @transform_8, window_bounds = array<i64: 1, 1, 128>}]} {
    %c0 = arith.constant 0 : index
    %c0_0 = arith.constant 0 : index
    %0 = vector.load %arg3[%c0, %c0_0] : memref<1x128xf32, #tpu.memory_space<vmem>>, vector<1x128xf32>
    %c0_1 = arith.constant 0 : index
    %c0_2 = arith.constant 0 : index
    %1 = vector.load %arg4[%c0_1, %c0_2] : memref<1x128xf32, #tpu.memory_space<vmem>>, vector<1x128xf32>
    %c0_3 = arith.constant 0 : index
    %c0_4 = arith.constant 0 : index
    %c0_5 = arith.constant 0 : index
    %2 = vector.load %arg1[%c0_3, %c0_4, %c0_5] : memref<1x16x512xbf16, #tpu.memory_space<vmem>>, vector<1x16x512xbf16>
    %3 = vector.shape_cast %2 : vector<1x16x512xbf16> to vector<16x512xbf16>
    %c0_6 = arith.constant 0 : index
    %c0_7 = arith.constant 0 : index
    %4 = vector.load %arg2[%c0_6, %c0_7] : memref<512x128xbf16, #tpu.memory_space<vmem>>, vector<512x128xbf16>
    %cst = arith.constant dense<0.000000e+00> : vector<16x128xf32>
    %5 = tpu.matmul %3, %4, %cst {dimension_numbers = #tpu.dot_dimension_numbers<[1], [0], [0], [1], [0, 0, 1, 1], [], []>} : vector<16x512xbf16>, vector<512x128xbf16>, vector<16x128xf32> -> vector<16x128xf32>
    %6 = vector.broadcast %0 : vector<1x128xf32> to vector<16x128xf32>
    %7 = arith.mulf %5, %6 : vector<16x128xf32>
    %8 = vector.broadcast %1 : vector<1x128xf32> to vector<16x128xf32>
    %9 = arith.addf %7, %8 : vector<16x128xf32>
    %cst_8 = arith.constant 0.000000e+00 : f32
    %10 = vector.broadcast %cst_8 : f32 to vector<16x128xf32>
    %11 = arith.maximumf %9, %10 : vector<16x128xf32>
    %12 = vector.shape_cast %11 : vector<16x128xf32> to vector<1x2x8x128xf32>
    %13 = vector.extract_strided_slice %12 {offsets = [0, 0, 0, 0], sizes = [1, 1, 8, 128], strides = [1, 1, 1, 1]} : vector<1x2x8x128xf32> to vector<1x1x8x128xf32>
    %14 = vector.shape_cast %13 : vector<1x1x8x128xf32> to vector<1x8x128xf32>
    %15 = vector.extract_strided_slice %12 {offsets = [0, 1, 0, 0], sizes = [1, 1, 8, 128], strides = [1, 1, 1, 1]} : vector<1x2x8x128xf32> to vector<1x1x8x128xf32>
    %16 = vector.shape_cast %15 : vector<1x1x8x128xf32> to vector<1x8x128xf32>
    %17 = arith.maximumf %14, %16 : vector<1x8x128xf32>
    %18 = vector.extract_strided_slice %17 {offsets = [0, 0, 0], sizes = [1, 8, 64], strides = [1, 1, 1]} : vector<1x8x128xf32> to vector<1x8x64xf32>
    %19 = vector.extract_strided_slice %17 {offsets = [0, 0, 64], sizes = [1, 8, 64], strides = [1, 1, 1]} : vector<1x8x128xf32> to vector<1x8x64xf32>
    %20 = arith.maximumf %18, %19 : vector<1x8x64xf32>
    %cst_9 = arith.constant 0.000000e+00 : f32
    %21 = vector.broadcast %cst_9 : f32 to vector<1x128xf32>
    %22 = vector.extract_strided_slice %20 {offsets = [0, 0, 0], sizes = [1, 1, 64], strides = [1, 1, 1]} : vector<1x8x64xf32> to vector<1x1x64xf32>
    %23 = vector.shape_cast %22 : vector<1x1x64xf32> to vector<1x64xf32>
    %24 = vector.extract_strided_slice %20 {offsets = [0, 1, 0], sizes = [1, 1, 64], strides = [1, 1, 1]} : vector<1x8x64xf32> to vector<1x1x64xf32>
    %25 = vector.shape_cast %24 : vector<1x1x64xf32> to vector<1x64xf32>
    %26 = tpu.concatenate %23, %25 in 1 : vector<1x64xf32>, vector<1x64xf32> -> vector<1x128xf32>
    %27 = arith.truncf %26 : vector<1x128xf32> to vector<1x128xbf16>
    %c0_10 = arith.constant 0 : index
    %c0_11 = arith.constant 0 : index
    %28 = vector.load %arg5[%c0_10, %c0_11] : memref<512x128xbf16, #tpu.memory_space<vmem>>, vector<128x128xbf16>
    %cst_12 = arith.constant dense<0.000000e+00> : vector<1x128xf32>
    %29 = tpu.matmul %27, %28, %cst_12 {dimension_numbers = #tpu.dot_dimension_numbers<[1], [0], [0], [1], [0, 0, 1, 1], [], []>} : vector<1x128xbf16>, vector<128x128xbf16>, vector<1x128xf32> -> vector<1x128xf32>
    %30 = arith.addf %21, %29 : vector<1x128xf32>
    %31 = vector.extract_strided_slice %20 {offsets = [0, 2, 0], sizes = [1, 1, 64], strides = [1, 1, 1]} : vector<1x8x64xf32> to vector<1x1x64xf32>
    %32 = vector.shape_cast %31 : vector<1x1x64xf32> to vector<1x64xf32>
    %33 = vector.extract_strided_slice %20 {offsets = [0, 3, 0], sizes = [1, 1, 64], strides = [1, 1, 1]} : vector<1x8x64xf32> to vector<1x1x64xf32>
    %34 = vector.shape_cast %33 : vector<1x1x64xf32> to vector<1x64xf32>
    %35 = tpu.concatenate %32, %34 in 1 : vector<1x64xf32>, vector<1x64xf32> -> vector<1x128xf32>
    %36 = arith.truncf %35 : vector<1x128xf32> to vector<1x128xbf16>
    %c128 = arith.constant 128 : index
    %c0_13 = arith.constant 0 : index
    %37 = vector.load %arg5[%c128, %c0_13] : memref<512x128xbf16, #tpu.memory_space<vmem>>, vector<128x128xbf16>
    %cst_14 = arith.constant dense<0.000000e+00> : vector<1x128xf32>
    %38 = tpu.matmul %36, %37, %cst_14 {dimension_numbers = #tpu.dot_dimension_numbers<[1], [0], [0], [1], [0, 0, 1, 1], [], []>} : vector<1x128xbf16>, vector<128x128xbf16>, vector<1x128xf32> -> vector<1x128xf32>
    %39 = arith.addf %30, %38 : vector<1x128xf32>
    %40 = vector.extract_strided_slice %20 {offsets = [0, 4, 0], sizes = [1, 1, 64], strides = [1, 1, 1]} : vector<1x8x64xf32> to vector<1x1x64xf32>
    %41 = vector.shape_cast %40 : vector<1x1x64xf32> to vector<1x64xf32>
    %42 = vector.extract_strided_slice %20 {offsets = [0, 5, 0], sizes = [1, 1, 64], strides = [1, 1, 1]} : vector<1x8x64xf32> to vector<1x1x64xf32>
    %43 = vector.shape_cast %42 : vector<1x1x64xf32> to vector<1x64xf32>
    %44 = tpu.concatenate %41, %43 in 1 : vector<1x64xf32>, vector<1x64xf32> -> vector<1x128xf32>
    %45 = arith.truncf %44 : vector<1x128xf32> to vector<1x128xbf16>
    %c256 = arith.constant 256 : index
    %c0_15 = arith.constant 0 : index
    %46 = vector.load %arg5[%c256, %c0_15] : memref<512x128xbf16, #tpu.memory_space<vmem>>, vector<128x128xbf16>
    %cst_16 = arith.constant dense<0.000000e+00> : vector<1x128xf32>
    %47 = tpu.matmul %45, %46, %cst_16 {dimension_numbers = #tpu.dot_dimension_numbers<[1], [0], [0], [1], [0, 0, 1, 1], [], []>} : vector<1x128xbf16>, vector<128x128xbf16>, vector<1x128xf32> -> vector<1x128xf32>
    %48 = arith.addf %39, %47 : vector<1x128xf32>
    %49 = vector.extract_strided_slice %20 {offsets = [0, 6, 0], sizes = [1, 1, 64], strides = [1, 1, 1]} : vector<1x8x64xf32> to vector<1x1x64xf32>
    %50 = vector.shape_cast %49 : vector<1x1x64xf32> to vector<1x64xf32>
    %51 = vector.extract_strided_slice %20 {offsets = [0, 7, 0], sizes = [1, 1, 64], strides = [1, 1, 1]} : vector<1x8x64xf32> to vector<1x1x64xf32>
    %52 = vector.shape_cast %51 : vector<1x1x64xf32> to vector<1x64xf32>
    %53 = tpu.concatenate %50, %52 in 1 : vector<1x64xf32>, vector<1x64xf32> -> vector<1x128xf32>
    %54 = arith.truncf %53 : vector<1x128xf32> to vector<1x128xbf16>
    %c384 = arith.constant 384 : index
    %c0_17 = arith.constant 0 : index
    %55 = vector.load %arg5[%c384, %c0_17] : memref<512x128xbf16, #tpu.memory_space<vmem>>, vector<128x128xbf16>
    %cst_18 = arith.constant dense<0.000000e+00> : vector<1x128xf32>
    %56 = tpu.matmul %54, %55, %cst_18 {dimension_numbers = #tpu.dot_dimension_numbers<[1], [0], [0], [1], [0, 0, 1, 1], [], []>} : vector<1x128xbf16>, vector<128x128xbf16>, vector<1x128xf32> -> vector<1x128xf32>
    %57 = arith.addf %48, %56 : vector<1x128xf32>
    %c0_19 = arith.constant 0 : index
    %c0_20 = arith.constant 0 : index
    %58 = vector.load %arg6[%c0_19, %c0_20] : memref<1x128xf32, #tpu.memory_space<vmem>>, vector<1x128xf32>
    %59 = arith.addf %57, %58 : vector<1x128xf32>
    %cst_21 = arith.constant 0.000000e+00 : f32
    %60 = vector.broadcast %cst_21 : f32 to vector<1x128xf32>
    %61 = arith.maximumf %59, %60 : vector<1x128xf32>
    %62 = arith.truncf %61 : vector<1x128xf32> to vector<1x128xbf16>
    %c0_22 = arith.constant 0 : index
    %c0_23 = arith.constant 0 : index
    %63 = vector.load %arg7[%c0_22, %c0_23] : memref<128x128xbf16, #tpu.memory_space<vmem>>, vector<128x128xbf16>
    %cst_24 = arith.constant dense<0.000000e+00> : vector<1x128xf32>
    %64 = tpu.matmul %62, %63, %cst_24 {dimension_numbers = #tpu.dot_dimension_numbers<[1], [0], [0], [1], [0, 0, 1, 1], [], []>} : vector<1x128xbf16>, vector<128x128xbf16>, vector<1x128xf32> -> vector<1x128xf32>
    %c0_25 = arith.constant 0 : index
    %c0_26 = arith.constant 0 : index
    %65 = vector.load %arg8[%c0_25, %c0_26] : memref<1x128xf32, #tpu.memory_space<vmem>>, vector<1x128xf32>
    %66 = arith.addf %64, %65 : vector<1x128xf32>
    %cst_27 = arith.constant 0.000000e+00 : f32
    %67 = vector.broadcast %cst_27 : f32 to vector<1x128xf32>
    %68 = arith.maximumf %66, %67 : vector<1x128xf32>
    %69 = vector.shape_cast %68 : vector<1x128xf32> to vector<1x1x128xf32>
    %c0_28 = arith.constant 0 : index
    %c0_29 = arith.constant 0 : index
    %c0_30 = arith.constant 0 : index
    %70 = vector.load %arg9[%c0_28, %c0_29, %c0_30] : memref<1x1x128xf32, #tpu.memory_space<vmem>>, vector<1x1x128xf32>
    tpu.vector_store %arg9[%c0_28, %c0_29, %c0_30], %69 {strides = array<i32>} : memref<1x1x128xf32, #tpu.memory_space<vmem>>, vector<1x1x128xf32>,
    return
  }
  func.func @transform_0(%arg0: i32) -> (i32, i32, i32) {
    %c0_i32 = arith.constant 0 : i32
    %c0_i32_0 = arith.constant 0 : i32
    %c0_i32_1 = arith.constant 0 : i32
    return %arg0, %c0_i32, %c0_i32_0 : i32, i32, i32
  }
  func.func @transform_1(%arg0: i32) -> (i32, i32) {
    %c0_i32 = arith.constant 0 : i32
    %c0_i32_0 = arith.constant 0 : i32
    %c0_i32_1 = arith.constant 0 : i32
    return %c0_i32, %c0_i32_0 : i32, i32
  }
  func.func @transform_2(%arg0: i32) -> (i32, i32) {
    %c0_i32 = arith.constant 0 : i32
    %c0_i32_0 = arith.constant 0 : i32
    %c0_i32_1 = arith.constant 0 : i32
    return %c0_i32, %c0_i32_0 : i32, i32
  }
  func.func @transform_3(%arg0: i32) -> (i32, i32) {
    %c0_i32 = arith.constant 0 : i32
    %c0_i32_0 = arith.constant 0 : i32
    %c0_i32_1 = arith.constant 0 : i32
    return %c0_i32, %c0_i32_0 : i32, i32
  }
  func.func @transform_4(%arg0: i32) -> (i32, i32) {
    %c0_i32 = arith.constant 0 : i32
    %c0_i32_0 = arith.constant 0 : i32
    %c0_i32_1 = arith.constant 0 : i32
    return %c0_i32, %c0_i32_0 : i32, i32
  }
  func.func @transform_5(%arg0: i32) -> (i32, i32) {
    %c0_i32 = arith.constant 0 : i32
    %c0_i32_0 = arith.constant 0 : i32
    %c0_i32_1 = arith.constant 0 : i32
    return %c0_i32, %c0_i32_0 : i32, i32
  }
  func.func @transform_6(%arg0: i32) -> (i32, i32) {
    %c0_i32 = arith.constant 0 : i32
    %c0_i32_0 = arith.constant 0 : i32
    %c0_i32_1 = arith.constant 0 : i32
    return %c0_i32, %c0_i32_0 : i32, i32
  }
  func.func @transform_7(%arg0: i32) -> (i32, i32) {
    %c0_i32 = arith.constant 0 : i32
    %c0_i32_0 = arith.constant 0 : i32
    %c0_i32_1 = arith.constant 0 : i32
    return %c0_i32, %c0_i32_0 : i32, i32
  }
  func.func @transform_8(%arg0: i32) -> (i32, i32, i32) {
    %c0_i32 = arith.constant 0 : i32
    %c0_i32_0 = arith.constant 0 : i32
    %c0_i32_1 = arith.constant 0 : i32
    return %arg0, %c0_i32, %c0_i32_0 : i32, i32, i32
  }
}

</mosaic_0001>

<bundles_post_ra>
// kernel: encoder_forward.1
= control target key start
LH: loop header
LB: loop body
LE: loop exit
PB: predicated region body
PF: predicated region fallthrough
CT: control target
= control target key end

     0   :  { %s1569_s27 = smov 0   ;;  %s1824_s0 = inlined_call_operand.vmem [shape: bf16[2,16,512], index: 0, kind: input, shape index: {}]   ;;  %s1825_s1 = inlined_call_operand.vmem [shape: bf16[512,128], index: 1, kind: input, shape index: {}]   ;;  %s1826_s2 = inlined_call_operand.vmem [shape: f32[1,128], index: 2, kind: input, shape index: {}]   ;;  %s1827_s3 = inlined_call_operand.vmem [shape: f32[1,128], index: 3, kind: input, shape index: {}]   ;;  %s1828_s4 = inlined_call_operand.vmem [shape: bf16[512,128], index: 4, kind: input, shape index: {}]   ;;  %s1829_s5 = inlined_call_operand.vmem [shape: f32[1,128], index: 5, kind: input, shape index: {}]   ;;  %s1830_s6 = inlined_call_operand.vmem [shape: bf16[128,128], index: 6, kind: input, shape index: {}]   ;;  %s1831_s7 = inlined_call_operand.vmem [shape: f32[1,128], index: 7, kind: input, shape index: {}]   ;;  %s1832_s8 = inlined_call_operand.vmem [shape: f32[2,1,128], index: 8, kind: output, shape index: {}]  }
   0x1 LB: > { %s1114_s28 = sadd.s32 4294967295, %s1521_s27   ;;  %p1118_p0 = scmp.ge.s32.totalorder %s1521_s27, 1  ;;  %s1521_s27 = sphi %s1569_s27, %s18_s27  }
   0x2   : > { %p262_p1 = scmp.lt.s32.totalorder %s1521_s27, 3 }
   0x4   : > { %p263_p2 = pnand %p1118_p0, %p262_p1 }
   0x5   : > { %p294_p3 = scmp.lt.s32.totalorder (!%p263_p2), %s1114_s28, 1  ;;  %s1523_s19 = smov (!%p263_p2), 64  }
   0x6   : > { %266 = sbr.rel (%p263_p2) target bundleno = 712 (0x2c8), region = 52 }
   0xb   : > { %v1439_v0 = vld [vmem:[%s1825_s1 + $0x38] sm:$0xff]  ;;  %v1438_v4 = vld [vmem:[%s1825_s1 + $0x30] sm:$0xff]  ;;  %v1437_v8 = vld [vmem:[%s1825_s1 + $0x28] sm:$0xff]  ;;  %s1834_s28 = smov (!%p294_p3, %s1114_s28), 1  ;;  %vm663_vm0 = vcmask 523264  }
   0xc   : > { %v1447_v1 = vld [vmem:[%s1825_s1 + $0x78] sm:$0xff]  ;;  %584 = vmatpush.bf16.msra.mxu0 %v1439_v0  ;;  %v1446_v5 = vld [vmem:[%s1825_s1 + $0x70] sm:$0xff]  ;;  %v1445_v9 = vld [vmem:[%s1825_s1 + $0x68] sm:$0xff]  ;;  %s1427_s15 = sshll.u32 %s1834_s28, 5  ;;  %s301_s30 = scalar_lea.vmem %s1832_s8, %s1834_s28 }
   0xd   : > { %v1455_v2 = vld [vmem:[%s1825_s1 + $0xb8] sm:$0xff]  ;;  %598 = vmatpush.bf16.msra.mxu1 %v1447_v1  ;;  %v1454_v6 = vld [vmem:[%s1825_s1 + $0xb0] sm:$0xff]  ;;  %v1453_v10 = vld [vmem:[%s1825_s1 + $0xa8] sm:$0xff]  ;;  %s298_s22 = scalar_lea.vmem %s1824_s0, %s1427_s15 }
   0xe   : > { %v1463_v3 = vld [vmem:[%s1825_s1 + $0xf8] sm:$0xff]  ;;  %612 = vmatpush.bf16.msra.mxu2 %v1455_v2  ;;  %v1462_v7 = vld [vmem:[%s1825_s1 + $0xf0] sm:$0xff]  ;;  %v1461_v11 = vld [vmem:[%s1825_s1 + $0xe8] sm:$0xff] }
   0xf   : > { %626 = vmatpush.bf16.msra.mxu3 %v1463_v3  ;;  %v1436_v12 = vld [vmem:[%s1825_s1 + $0x20] sm:$0xff]  ;;  %v1435_v16 = vld [vmem:[%s1825_s1 + $0x18] sm:$0xff]  ;;  %v1434_v20 = vld [vmem:[%s1825_s1 + $0x10] sm:$0xff] }
  0x10   : > { %585 = vmatpush.bf16.msra.mxu0 %v1438_v4  ;;  %v1444_v13 = vld [vmem:[%s1825_s1 + $0x60] sm:$0xff]  ;;  %v1443_v17 = vld [vmem:[%s1825_s1 + $0x58] sm:$0xff]  ;;  %v1442_v21 = vld [vmem:[%s1825_s1 + $0x50] sm:$0xff] }
  0x11   : > { %599 = vmatpush.bf16.msra.mxu1 %v1446_v5  ;;  %v1452_v14 = vld [vmem:[%s1825_s1 + $0xa0] sm:$0xff]  ;;  %v1451_v18 = vld [vmem:[%s1825_s1 + $0x98] sm:$0xff]  ;;  %v1450_v22 = vld [vmem:[%s1825_s1 + $0x90] sm:$0xff] }
  0x12   : > { %613 = vmatpush.bf16.msra.mxu2 %v1454_v6  ;;  %v1460_v15 = vld [vmem:[%s1825_s1 + $0xe0] sm:$0xff]  ;;  %v1459_v19 = vld [vmem:[%s1825_s1 + $0xd8] sm:$0xff]  ;;  %v1458_v23 = vld [vmem:[%s1825_s1 + $0xd0] sm:$0xff] }
  0x13   : > { %627 = vmatpush.bf16.msra.mxu3 %v1462_v7  ;;  %v1433_v24 = vld [vmem:[%s1825_s1 + $0x8] sm:$0xff]  ;;  %v1432_v28 = vld [vmem:[%s1825_s1] sm:$0xff]  ;;  %v1430_v33 = vld [vmem:[%s298_s22 + $0xc] sm:$0xf0] }
  0x14   : > { %586 = vmatpush.bf16.msra.mxu0 %v1437_v8  ;;  %v1441_v25 = vld [vmem:[%s1825_s1 + $0x48] sm:$0xff]  ;;  %v1440_v29 = vld [vmem:[%s1825_s1 + $0x40] sm:$0xff]  ;;  %v1125_v35 = vld [vmem:[%s298_s22 + $0x10] sm:$0xf0] }
  0x15   : > { %600 = vmatpush.bf16.msra.mxu1 %v1445_v9  ;;  %v1449_v26 = vld [vmem:[%s1825_s1 + $0x88] sm:$0xff]  ;;  %v1448_v30 = vld [vmem:[%s1825_s1 + $0x80] sm:$0xff]  ;;  %v1431_v37 = vld [vmem:[%s298_s22 + $0x14] sm:$0xf0] }
  0x16   : > { %614 = vmatpush.bf16.msra.mxu2 %v1453_v10  ;;  %v1457_v27 = vld [vmem:[%s1825_s1 + $0xc8] sm:$0xff]  ;;  %v1456_v31 = vld [vmem:[%s1825_s1 + $0xc0] sm:$0xff]  ;;  %v1133_v39 = vld [vmem:[%s298_s22 + $0x18] sm:$0xf0] }
  0x17   : > { %628 = vmatpush.bf16.msra.mxu3 %v1461_v11  ;;  %v1123_v32 = vld [vmem:[%s298_s22] sm:$0xf]  ;;  %v1428_v34 = vld [vmem:[%s298_s22 + $0x4] sm:$0xf]  ;;  %v1131_v36 = vld [vmem:[%s298_s22 + $0x8] sm:$0xf] }
  0x18   : > { %587 = vmatpush.bf16.msra.mxu0 %v1436_v12  ;;  %v1429_v38 = vld [vmem:[%s298_s22 + $0xc] sm:$0xf]  ;;  %v1124_v40 = vor.u32 %v1430_v33, %v1123_v32  ;;  %v1128_v41 = vor.u32 %v1428_v34, %v1125_v35  ;;  %v1132_v42 = vor.u32 %v1431_v37, %v1131_v36  ;;  %v1513_v53 = vld [vmem:[%s1826_s2] ss:$0 sm:$0xff]  ;;  %v1471_v3 = vld [vmem:[%s1828_s4 + $0x38] sm:$0xff] }
  0x19   : > { %601 = vmatpush.bf16.msra.mxu1 %v1444_v13  ;;  %v1136_v43 = vor.u32 %v1429_v38, %v1133_v39  ;;  %v1514_v58 = vld [vmem:[%s1827_s3] ss:$0 sm:$0xff]  ;;  %v1479_v4 = vld [vmem:[%s1828_s4 + $0x78] sm:$0xff]  ;;  %v1470_v7 = vld [vmem:[%s1828_s4 + $0x30] sm:$0xff] }
  0x1a   : > { %615 = vmatpush.bf16.msra.mxu2 %v1452_v14  ;;  %v1487_v5 = vld [vmem:[%s1828_s4 + $0xb8] sm:$0xff]  ;;  %v1478_v8 = vld [vmem:[%s1828_s4 + $0x70] sm:$0xff]  ;;  %v1469_v11 = vld [vmem:[%s1828_s4 + $0x28] sm:$0xff] }
  0x1b   : > { %629 = vmatpush.bf16.msra.mxu3 %v1460_v15  ;;  %v1495_v6 = vld [vmem:[%s1828_s4 + $0xf8] sm:$0xff]  ;;  %v1486_v9 = vld [vmem:[%s1828_s4 + $0xb0] sm:$0xff]  ;;  %v1477_v12 = vld [vmem:[%s1828_s4 + $0x68] sm:$0xff] }
  0x1c   : > { %588 = vmatpush.bf16.msra.mxu0 %v1435_v16  ;;  %v1494_v10 = vld [vmem:[%s1828_s4 + $0xf0] sm:$0xff]  ;;  %v1485_v13 = vld [vmem:[%s1828_s4 + $0xa8] sm:$0xff]  ;;  %v1468_v15 = vld [vmem:[%s1828_s4 + $0x20] sm:$0xff] }
  0x1d   : > { %602 = vmatpush.bf16.msra.mxu1 %v1443_v17  ;;  %v1493_v14 = vld [vmem:[%s1828_s4 + $0xe8] sm:$0xff]  ;;  %v1476_v16 = vld [vmem:[%s1828_s4 + $0x60] sm:$0xff]  ;;  %v1503_v38 = vld [vmem:[%s1830_s6 + $0x38] sm:$0xff] }
  0x1e   : > { %616 = vmatpush.bf16.msra.mxu2 %v1451_v18  ;;  %v1484_v17 = vld [vmem:[%s1828_s4 + $0xa0] sm:$0xff]  ;;  %v1502_v39 = vld [vmem:[%s1830_s6 + $0x30] sm:$0xff] }
  0x1f   : > { %630 = vmatpush.bf16.msra.mxu3 %v1459_v19  ;;  %v1492_v18 = vld [vmem:[%s1828_s4 + $0xe0] sm:$0xff]  ;;  %v1467_v19 = vld [vmem:[%s1828_s4 + $0x18] sm:$0xff] }
  0x20   : > { %589 = vmatpush.bf16.msra.mxu0 %v1434_v20  ;;  %v1475_v20 = vld [vmem:[%s1828_s4 + $0x58] sm:$0xff]  ;;  %v1464_v34 = vld [vmem:[%s1828_s4] sm:$0xff] }
  0x21   : > { %603 = vmatpush.bf16.msra.mxu1 %v1442_v21  ;;  %v1483_v21 = vld [vmem:[%s1828_s4 + $0x98] sm:$0xff]  ;;  %v1472_v35 = vld [vmem:[%s1828_s4 + $0x40] sm:$0xff] }
  0x22   : > { %617 = vmatpush.bf16.msra.mxu2 %v1450_v22  ;;  %v1491_v22 = vld [vmem:[%s1828_s4 + $0xd8] sm:$0xff]  ;;  %v1480_v36 = vld [vmem:[%s1828_s4 + $0x80] sm:$0xff] }
  0x23   : > { %631 = vmatpush.bf16.msra.mxu3 %v1458_v23  ;;  %v1466_v23 = vld [vmem:[%s1828_s4 + $0x10] sm:$0xff]  ;;  %v1488_v37 = vld [vmem:[%s1828_s4 + $0xc0] sm:$0xff] }
  0x24   : > { %590 = vmatpush.bf16.msra.mxu0 %v1433_v24  ;;  %v1474_v24 = vld [vmem:[%s1828_s4 + $0x50] sm:$0xff] }
  0x25   : > { %604 = vmatpush.bf16.msra.mxu1 %v1441_v25  ;;  %v1482_v25 = vld [vmem:[%s1828_s4 + $0x90] sm:$0xff] }
  0x26   : > { %618 = vmatpush.bf16.msra.mxu2 %v1449_v26  ;;  %v1490_v26 = vld [vmem:[%s1828_s4 + $0xd0] sm:$0xff] }
  0x27   : > { %632 = vmatpush.bf16.msra.mxu3 %v1457_v27  ;;  %v1465_v27 = vld [vmem:[%s1828_s4 + $0x8] sm:$0xff] }
  0x28   : > { %591 = vmatpush.bf16.msra.mxu0 %v1432_v28  ;;  %v1473_v28 = vld [vmem:[%s1828_s4 + $0x48] sm:$0xff] }
  0x29   : > { %605 = vmatpush.bf16.msra.mxu1 %v1440_v29  ;;  %v1481_v29 = vld [vmem:[%s1828_s4 + $0x88] sm:$0xff] }
  0x2a   : > { %619 = vmatpush.bf16.msra.mxu2 %v1448_v30  ;;  %v1489_v30 = vld [vmem:[%s1828_s4 + $0xc8] sm:$0xff] }
  0x2b   : > { %633 = vmatpush.bf16.msra.mxu3 %v1456_v31  ;;  %592 = vmatmul.bf16.vlgmr.msra.gmra.mxu0 %v1124_v40  ;;  %v1501_v40 = vld [vmem:[%s1830_s6 + $0x28] sm:$0xff] }
  0x2c   : > { %606 = vmatmul.bf16.vlgmr.msra.gmra.mxu1 %v1128_v41  ;;  %749 = vmatpush.bf16.msrb.mxu0 %v1479_v4 }
  0x2d   : > { %620 = vmatmul.bf16.vlgmr.msra.gmra.mxu2 %v1132_v42  ;;  %810 = vmatpush.bf16.msrb.mxu1 %v1471_v3  ;;  %v1003_v3 = vld [vmem:[%s1831_s7] sm:$0x1] }
  0x2e   : > { %634 = vmatmul.bf16.vlgmr.msra.gmra.mxu3 %v1136_v43  ;;  %889 = vmatpush.bf16.msrb.mxu2 %v1487_v5 }
  0x2f   : > { %969 = vmatpush.bf16.msrb.mxu3 %v1495_v6 }
  0x30   : > { %750 = vmatpush.bf16.msrb.mxu0 %v1478_v8 }
  0x31   : > { %811 = vmatpush.bf16.msrb.mxu1 %v1470_v7 }
  0x32   : > { %890 = vmatpush.bf16.msrb.mxu2 %v1486_v9 }
  0x33   : > { %970 = vmatpush.bf16.msrb.mxu3 %v1494_v10 }
  0x34   : > { %751 = vmatpush.bf16.msrb.mxu0 %v1477_v12 }
  0x35   : > { %812 = vmatpush.bf16.msrb.mxu1 %v1469_v11 }
  0x36   : > { %891 = vmatpush.bf16.msrb.mxu2 %v1485_v13 }
  0x37   : > { %971 = vmatpush.bf16.msrb.mxu3 %v1493_v14 }
  0x38   : > { %752 = vmatpush.bf16.msrb.mxu0 %v1476_v16 }
  0x39   : > { %813 = vmatpush.bf16.msrb.mxu1 %v1468_v15 }
  0x3a   : > { %892 = vmatpush.bf16.msrb.mxu2 %v1484_v17 }
  0x3b   : > { %972 = vmatpush.bf16.msrb.mxu3 %v1492_v18 }
  0x3c   : > { %753 = vmatpush.bf16.msrb.mxu0 %v1475_v20 }
  0x3d   : > { %814 = vmatpush.bf16.msrb.mxu1 %v1467_v19 }
  0x3e   : > { %893 = vmatpush.bf16.msrb.mxu2 %v1483_v21 }
  0x3f   : > { %973 = vmatpush.bf16.msrb.mxu3 %v1491_v22 }
  0x40   : > { %754 = vmatpush.bf16.msrb.mxu0 %v1474_v24 }
  0x41   : > { %815 = vmatpush.bf16.msrb.mxu1 %v1466_v23 }
  0x42   : > { %894 = vmatpush.bf16.msrb.mxu2 %v1482_v25 }
  0x43   : > { %974 = vmatpush.bf16.msrb.mxu3 %v1490_v26 }
  0x44   : > { %755 = vmatpush.bf16.msrb.mxu0 %v1473_v28 }
  0x45   : > { %816 = vmatpush.bf16.msrb.mxu1 %v1465_v27 }
  0x46   : > { %895 = vmatpush.bf16.msrb.mxu2 %v1481_v29 }
  0x47   : > { %975 = vmatpush.bf16.msrb.mxu3 %v1489_v30 }
  0x48   : > { %756 = vmatpush.bf16.msrb.mxu0 %v1472_v35 }
  0x49   : > { %817 = vmatpush.bf16.msrb.mxu1 %v1464_v34 }
  0x4a   : > { %896 = vmatpush.bf16.msrb.mxu2 %v1480_v36 }
  0x4b   : > { %976 = vmatpush.bf16.msrb.mxu3 %v1488_v37 }
  0x4c   : > { %1052 = vmatpush.bf16.msra.mxu0 %v1503_v38 }
  0x50   : > { %1053 = vmatpush.bf16.msra.mxu0 %v1502_v39 }
  0x54   : > { %1054 = vmatpush.bf16.msra.mxu0 %v1501_v40 }
  0xa8   : > { %v593_v44 = vpop.f32.mrf.mxu0 }
  0xa9   : > { %v607_v45 = vpop.f32.mrf.mxu1 }
  0xaa   : > { %v608_v46 = vadd.f32 %v607_v45, %v593_v44 }
  0xb0   : > { %v621_v47 = vpop.f32.mrf.mxu2  ;;  %v595_v50 = vpop.f32.mrf.mxu0 }
  0xb1   : > { %v635_v48 = vpop.f32.mrf.mxu3  ;;  %v622_v49 = vadd.f32 %v621_v47, %v608_v46  ;;  %v609_v51 = vpop.f32.mrf.mxu1  ;;  %v1500_v47 = vld [vmem:[%s1830_s6 + $0x20] sm:$0xff] }
  0xb2   : > { %v610_v54 = vadd.f32 %v609_v51, %v595_v50  ;;  %1055 = vmatpush.bf16.msra.mxu0 %v1500_v47  ;;  %v1497_v50 = vld [vmem:[%s1830_s6 + $0x8] sm:$0xff]  ;;  %v1496_v51 = vld [vmem:[%s1830_s6] sm:$0xff] }
  0xb3   : > { %v636_v52 = vadd.f32 %v635_v48, %v622_v49  ;;  %v1499_v48 = vld [vmem:[%s1830_s6 + $0x18] sm:$0xff]  ;;  %v1498_v49 = vld [vmem:[%s1830_s6 + $0x10] sm:$0xff] }
  0xb5   : > { %v643_v56 = vmul.f32 %v1513_v53, %v636_v52 }
  0xb6   : > { %1056 = vmatpush.bf16.msra.mxu0 %v1499_v48 }
  0xb7   : > { %v648_v62 = vadd.f32 %v1514_v58, %v643_v56 }
  0xb8   : > { %v623_v55 = vpop.f32.mrf.mxu2 }
  0xb9   : > { %v624_v57 = vadd.f32 %v623_v55, %v610_v54  ;;  %v637_v59 = vpop.f32.mrf.mxu3  ;;  %v650_v0 = vmax.f32 %v648_v62, 0.0 }
  0xba   : > { %1057 = vmatpush.bf16.msra.mxu0 %v1498_v49 }
  0xbb   : > { %v638_v60 = vadd.f32 %v637_v59, %v624_v57  ;;  %v983_v59 = vld [vmem:[%s1829_s5] sm:$0x1] }
  0xbd   : > { %v644_v61 = vmul.f32 %v1513_v53, %v638_v60 }
  0xbe   : > { %1058 = vmatpush.bf16.msra.mxu0 %v1497_v50 }
  0xbf   : > { %v649_v63 = vadd.f32 %v1514_v58, %v644_v61 }
  0xc1   : > { %v651_v1 = vmax.f32 %v649_v63, 0.0 }
  0xc2   : > { %1059 = vmatpush.bf16.msra.mxu0 %v1496_v51 }
  0xc3   : > { %v652_v2 = vmax.f32 %v650_v0, %v651_v1 }
  0xc5   : > { %654 = vrot.lane.b32.xlu0 %v652_v2, %s1523_s19 }
 0x137   : > { %v655_v31 = vpop.permute.xlu0 %654 }
 0x138   : > { %v657_v32 = vmax.f32 %v652_v2, %v655_v31 }
 0x13a   : > { %v659_v33 = vrot.slane %v657_v32, 1 }
 0x13c   : > { %660 = vrot.lane.b32.xlu0 %v659_v33, %s1523_s19 }
 0x1ae   : > { %v661_v41 = vpop.permute.xlu0 %660 }
 0x1af   : > { %v664_v42 = vsel %vm663_vm0, %v657_v32, %v661_v41 }
 0x1b0   : > { %v665_v43 = vpack.c.bf16 %v664_v42, %v664_v42 }
 0x1b2   : > { %818 = vmatmul.bf16.vlgmr.msrb.gmra.mxu1 %v665_v43  ;;  %v699_v44 = vrot.slane %v665_v43, 1  ;;  %v839_v45 = vrot.slane %v665_v43, 2  ;;  %v919_v46 = vrot.slane %v665_v43, 3 }
 0x1b4   : > { %757 = vmatmul.bf16.vlgmr.msrb.gmra.mxu0 %v699_v44  ;;  %897 = vmatmul.bf16.vlgmr.msrb.gmra.mxu2 %v839_v45 }
 0x1b5   : > { %977 = vmatmul.bf16.vlgmr.msrb.gmra.mxu3 %v919_v46 }
 0x22f   : > { %v819_v52 = vpop.f32.mrf.mxu1 }
 0x231   : > { %v758_v53 = vpop.f32.mrf.mxu0 }
 0x232   : > { %v820_v54 = vadd.f32 %v819_v52, %v758_v53 }
 0x237   : > { %v821_v55 = vpop.f32.mrf.mxu1  ;;  %v898_v56 = vpop.f32.mrf.mxu2 }
 0x238   : > { %v902_v57 = vadd.f32 %v898_v56, %v820_v54  ;;  %v978_v58 = vpop.f32.mrf.mxu3 }
 0x239   : > { %v760_v60 = vpop.f32.mrf.mxu0 }
 0x23a   : > { %v982_v61 = vadd.f32 %v978_v58, %v902_v57 }
 0x23c   : > { %v984_v62 = vadd.f32 %v983_v59, %v982_v61 }
 0x23e   : > { %v985_v63 = vmax.f32 %v984_v62, 0.0 }
 0x23f   : > { %v900_v0 = vpop.f32.mrf.mxu2 }
 0x240   : > { %v986_v1 = vpack.c.bf16 %v985_v63, %v985_v63  ;;  %v980_v2 = vpop.f32.mrf.mxu3 }
 0x242   : > { %1060 = vmatmul.bf16.vlgmr.msra.gmra.mxu0 %v986_v1 }
 0x2bf   : > { %v1061_v4 = vpop.f32.mrf.mxu0 }
 0x2c0   : > { %v1062_v5 = vadd.f32 %v1061_v4, %v1003_v3 }
 0x2c2   : > { %v1065_v6 = vmax.f32 %v1062_v5, 0.0 }
 0x2c4   : > { %1066 = vst [vmem:[%s301_s30] sm:$0x1] %v1065_v6 }
 0x2c7   : > { %v1063_v7 = vpop.f32.mrf.mxu0 }
 0x2c8 PF: > { %s18_s27 = sadd.s32 1, %s1521_s27  }
 0x2c9   : > { %p15_p4 = scmp.ge.s32.totalorder %s18_s27, 4  }
 0x2cb   :  { %17 = sbr.rel (!%p15_p4) target bundleno = 1 (0x1), region = 82 }

</bundles_post_ra>
